<compile_context>
chip_gen: v6e
topology: v6e:2x2x1
jax: 0.10.0
libtpu: 0.0.40
codegen_flags: <defaults>
</compile_context>

<pallas_src>
import functools

import jax
import jax.numpy as jnp
from jax import lax
from jax.experimental import pallas as pl
from jax.experimental.pallas import tpu as pltpu


# ----------------------------------------------------------------------------
# Kernels
# ----------------------------------------------------------------------------

def _layernorm_kernel(x_ref, g_ref, b_ref, o_ref, *, eps, c):
    """Main path: x_ref (TB, C, TL) tile; g_ref/b_ref (1, C, 1) resident."""
    x = x_ref[...].astype(jnp.float32)                       # (TB, C, TL)

    # Two-pass statistics over the channel axis (axis=1): numerically safe.
    mean = jnp.sum(x, axis=1, keepdims=True) * (1.0 / c)     # (TB, 1, TL)
    xc = x - mean
    var = jnp.sum(xc * xc, axis=1, keepdims=True) * (1.0 / (c - 1))  # unbiased
    std = jnp.sqrt(jnp.maximum(var, 0.0))
    # One exact reciprocal per (batch, position) on the reduced shape.
    inv = pl.reciprocal(std + eps, approx=False)             # (TB, 1, TL)

    g = g_ref[...].astype(jnp.float32)                       # (1, C, 1)
    b = b_ref[...].astype(jnp.float32)
    o_ref[...] = (xc * inv * g + b).astype(o_ref.dtype)


def _layernorm_kernel_2d(x_ref, g_ref, b_ref, o_ref, *, eps, c):
    """Small-L lane-dense path: x_ref (C, TL) with TL a slice of N*L."""
    x = x_ref[...].astype(jnp.float32)                       # (C, TL)
    mean = jnp.sum(x, axis=0, keepdims=True) * (1.0 / c)     # (1, TL)
    xc = x - mean
    var = jnp.sum(xc * xc, axis=0, keepdims=True) * (1.0 / (c - 1))
    std = jnp.sqrt(jnp.maximum(var, 0.0))
    inv = pl.reciprocal(std + eps, approx=False)
    g = g_ref[...].astype(jnp.float32)                       # (C, 1)
    b = b_ref[...].astype(jnp.float32)
    o_ref[...] = (xc * inv * g + b).astype(o_ref.dtype)


def _stats_kernel(x_ref, stats_ref, s_acc, ss_acc, *, eps, c, tc):
    """Large-C fallback, sweep 1: accumulate sum / sumsq over C tiles."""
    k = pl.program_id(2)

    @pl.when(k == 0)
    def _():
        s_acc[...] = jnp.zeros_like(s_acc)
        ss_acc[...] = jnp.zeros_like(ss_acc)

    x = x_ref[...].astype(jnp.float32)                       # (TB, TC, TL)
    # Mask channel padding in the last C tile: out-of-bounds block reads are
    # unspecified and would corrupt the reduction.
    cid = k * tc + lax.broadcasted_iota(jnp.int32, x.shape, 1)
    x = jnp.where(cid < c, x, 0.0)

    s_acc[...] += jnp.sum(x, axis=1, keepdims=True)
    ss_acc[...] += jnp.sum(x * x, axis=1, keepdims=True)

    @pl.when(k == pl.num_programs(2) - 1)
    def _():
        s = s_acc[...]
        mean = s * (1.0 / c)
        # TODO(synk): one-pass sumsq can lose precision vs. the two-pass main
        # path when |mean| >> std at huge C; add a third (centered) sweep if
        # such shapes ever matter.
        var = (ss_acc[...] - s * mean) * (1.0 / (c - 1))
        std = jnp.sqrt(jnp.maximum(var, 0.0))
        inv = pl.reciprocal(std + eps, approx=False)
        stats_ref[:, 0:1, :] = mean
        stats_ref[:, 1:2, :] = inv


def _normalize_kernel(x_ref, stats_ref, g_ref, b_ref, o_ref):
    """Large-C fallback, sweep 2: normalize each (TB, TC, TL) tile."""
    x = x_ref[...].astype(jnp.float32)
    mean = stats_ref[:, 0:1, :]
    inv = stats_ref[:, 1:2, :]
    g = g_ref[...].astype(jnp.float32)
    b = b_ref[...].astype(jnp.float32)
    o_ref[...] = ((x - mean) * inv * g + b).astype(o_ref.dtype)


# ----------------------------------------------------------------------------
# Tile / VMEM sizing
# ----------------------------------------------------------------------------

def _vmem_limit_bytes():
    """Generation-aware scoped-VMEM limit: ~75% of physical per-core VMEM
    (v5e/v6e: 128 MiB -> 96 MiB, v7x: 64 MiB -> 48 MiB). Falls back to the
    conservative v7x figure if the hardware query is unavailable."""
    phys = 64 * 1024 * 1024
    try:
        phys = int(pltpu.get_tpu_info().vmem_capacity_bytes)
    except Exception:
        pass
    return int(min((phys * 3) // 4, 96 * 1024 * 1024))


def _tile_budget_elems(itemsize, vmem_limit):
    """Max x-tile elements, counting the whole VMEM working set:
       in + out blocks, double-buffered, in x.dtype   -> 4 * itemsize  B/elem
       in-kernel f32 temporaries (x32, centered x, y) -> ~4 * 4        B/elem
    Capped at ~4 MiB of f32 per tile: that already reaches ~85% of the HBM
    roofline while amortizing the ~0.35 us/step pipeline overhead."""
    bytes_per_elem = 4 * itemsize + 16
    budget = (vmem_limit // 2) // bytes_per_elem          # keep 2x headroom
    return max(8 * 128, min(budget, (4 * 1024 * 1024) // 4))


def _choose_tiles(n, c, l, budget_elems):
    """Pick (TB, TL) for the main (full-C) path."""
    if l >= 128:
        max_tl = max(128, ((budget_elems // max(1, c)) // 128) * 128)
        tl = min((l // 128) * 128, max_tl)                # lane-dense tiles
    else:
        tl = l                                            # full extent (legal)
    tb = max(1, min(n, budget_elems // max(1, c * tl)))

    # Guarantee >= 2 grid steps along a parallel axis so both v7x TensorCores
    # get work and the DMA pipeline overlaps; prefer splitting the batch axis.
    if pl.cdiv(n, tb) * pl.cdiv(l, tl) < 2:
        if n > 1:
            tb = pl.cdiv(n, 2)
        elif l >= 256:
            tl = max(128, ((l // 2) // 128) * 128)
    return tb, tl


# ----------------------------------------------------------------------------
# Wrappers
# ----------------------------------------------------------------------------

def _layernorm_main(x, a_2, b_2, eps, vmem_limit, budget_elems):
    n, c, l = x.shape
    tb, tl = _choose_tiles(n, c, l, budget_elems)
    grid = (pl.cdiv(n, tb), pl.cdiv(l, tl))

    kernel = functools.partial(_layernorm_kernel, eps=float(eps), c=c)
    return pl.pallas_call(
        kernel,
        out_shape=jax.ShapeDtypeStruct((n, c, l), x.dtype),
        grid_spec=pltpu.PrefetchScalarGridSpec(
            num_scalar_prefetch=0,
            grid=grid,
            in_specs=[
                pl.BlockSpec((tb, c, tl), lambda i, j: (i, 0, j)),   # x tiles
                pl.BlockSpec((1, c, 1), lambda i, j: (0, 0, 0)),     # a_2
                pl.BlockSpec((1, c, 1), lambda i, j: (0, 0, 0)),     # b_2
            ],
            out_specs=pl.BlockSpec((tb, c, tl), lambda i, j: (i, 0, j)),
        ),
        compiler_params=pltpu.CompilerParams(
            dimension_semantics=("parallel", "parallel"),
            vmem_limit_bytes=vmem_limit,
        ),
    )(x, a_2, b_2)


def _layernorm_small_l(x, a_2, b_2, eps, vmem_limit, budget_elems):
    """Lane-dense path for small L: channel axis on sublanes, flattened N*L on
    lanes, so output stores are unmasked full-lane `vst`s. The wrapper
    transpose is one extra (cheap, XLA-side) HBM pass."""
    n, c, l = x.shape
    nl = n * l
    x2 = jnp.transpose(x, (1, 0, 2)).reshape(c, nl)
    g2 = a_2.reshape(c, 1)
    b2 = b_2.reshape(c, 1)

    max_tl = max(128, ((budget_elems // max(1, c)) // 128) * 128)
    tl = min((nl // 128) * 128, max_tl)
    if pl.cdiv(nl, tl) < 2 and nl >= 256:
        tl = max(128, ((nl // 2) // 128) * 128)
    grid = (pl.cdiv(nl, tl),)

    kernel = functools.partial(_layernorm_kernel_2d, eps=float(eps), c=c)
    y2 = pl.pallas_call(
        kernel,
        out_shape=jax.ShapeDtypeStruct((c, nl), x.dtype),
        grid_spec=pltpu.PrefetchScalarGridSpec(
            num_scalar_prefetch=0,
            grid=grid,
            in_specs=[
                pl.BlockSpec((c, tl), lambda j: (0, j)),
                pl.BlockSpec((c, 1), lambda j: (0, 0)),
                pl.BlockSpec((c, 1), lambda j: (0, 0)),
            ],
            out_specs=pl.BlockSpec((c, tl), lambda j: (0, j)),
        ),
        compiler_params=pltpu.CompilerParams(
            dimension_semantics=("parallel",),
            vmem_limit_bytes=vmem_limit,
        ),
    )(x2, g2, b2)
    return jnp.transpose(y2.reshape(c, n, l), (1, 0, 2))


def _layernorm_large_c(x, a_2, b_2, eps, vmem_limit, budget_elems):
    """Fallback when the full channel axis no longer fits the VMEM budget:
    sweep 1 accumulates sum / sumsq over C tiles (C = last, 'arbitrary' grid
    axis) into VMEM scratch and emits per-(batch, position) mean and
    1/(std+eps); sweep 2 re-reads x tile-by-tile and normalizes."""
    n, c, l = x.shape
    tl = 128 if l >= 128 else l
    tc = max(8, min(((budget_elems // max(1, tl)) // 8) * 8,
                    ((c + 7) // 8) * 8))
    tb = 1
    grid = (pl.cdiv(n, tb), pl.cdiv(l, tl), pl.cdiv(c, tc))

    stats = pl.pallas_call(
        functools.partial(_stats_kernel, eps=float(eps), c=c, tc=tc),
        out_shape=jax.ShapeDtypeStruct((n, 2, l), jnp.float32),
        grid_spec=pltpu.PrefetchScalarGridSpec(
            num_scalar_prefetch=0,
            grid=grid,
            in_specs=[pl.BlockSpec((tb, tc, tl), lambda i, j, k: (i, k, j))],
            out_specs=pl.BlockSpec((tb, 2, tl), lambda i, j, k: (i, 0, j)),
            scratch_shapes=[pltpu.VMEM((tb, 1, tl), jnp.float32),
                            pltpu.VMEM((tb, 1, tl), jnp.float32)],
        ),
        compiler_params=pltpu.CompilerParams(
            dimension_semantics=("parallel", "parallel", "arbitrary"),
            vmem_limit_bytes=vmem_limit,
        ),
    )(x)

    return pl.pallas_call(
        _normalize_kernel,
        out_shape=jax.ShapeDtypeStruct((n, c, l), x.dtype),
        grid_spec=pltpu.PrefetchScalarGridSpec(
            num_scalar_prefetch=0,
            grid=grid,
            in_specs=[
                pl.BlockSpec((tb, tc, tl), lambda i, j, k: (i, k, j)),  # x
                pl.BlockSpec((tb, 2, tl), lambda i, j, k: (i, 0, j)),   # stats
                pl.BlockSpec((1, tc, 1), lambda i, j, k: (0, k, 0)),    # a_2
                pl.BlockSpec((1, tc, 1), lambda i, j, k: (0, k, 0)),    # b_2
            ],
            out_specs=pl.BlockSpec((tb, tc, tl), lambda i, j, k: (i, k, j)),
        ),
        compiler_params=pltpu.CompilerParams(
            dimension_semantics=("parallel", "parallel", "parallel"),
            vmem_limit_bytes=vmem_limit,
        ),
    )(x, stats, a_2, b_2)


def layernorm_pallas(x, a_2, b_2, eps=1e-6):
    """x: (N, C, L). a_2, b_2: (1, C, 1). Returns (N, C, L) in x.dtype."""
    n, c, l = x.shape
    if c < 2:
        raise ValueError(
            "torch-default unbiased std requires C > 1 (divides by C-1)")

    itemsize = jnp.dtype(x.dtype).itemsize
    vmem_limit = _vmem_limit_bytes()
    budget_elems = _tile_budget_elems(itemsize, vmem_limit)

    # Small-L, many-positions: lane-dense (C, N*L) layout beats masked stores.
    if l < 128 and n * l >= 512 and c * 128 <= budget_elems:
        return _layernorm_small_l(x, a_2, b_2, eps, vmem_limit, budget_elems)

    # Does the full channel axis fit in one block at the minimal lane tile?
    tl_min = 128 if l >= 128 else l
    if c * tl_min > budget_elems:
        return _layernorm_large_c(x, a_2, b_2, eps, vmem_limit, budget_elems)

    return _layernorm_main(x, a_2, b_2, eps, vmem_limit, budget_elems)


def layernorm_ref(x, a_2, b_2, eps=1e-6):
    """Pure-JAX reference mirroring the PyTorch forward exactly."""
    x32 = x.astype(jnp.float32)
    mean = jnp.mean(x32, axis=1, keepdims=True)
    std = jnp.sqrt(jnp.var(x32, axis=1, keepdims=True, ddof=1))  # unbiased
    return (a_2 * (x32 - mean) / (std + eps) + b_2).astype(x.dtype)


if __name__ == "__main__":
    # Small shapes consistent with the module: (batch=2, channels=4, length=16)
    N, C, L = 2, 4, 16
    key = jax.random.PRNGKey(0)
    x = jax.random.normal(key, (N, C, L), dtype=jnp.float32)

    # Matches nn.Parameter(torch.ones(1, C, 1)) / torch.zeros(1, C, 1)
    a_2 = jnp.ones((1, C, 1), dtype=jnp.float32)
    b_2 = jnp.zeros((1, C, 1), dtype=jnp.float32)

    out = jax.block_until_ready(layernorm_pallas(x, a_2, b_2, eps=1e-6))
    ref = layernorm_ref(x, a_2, b_2, eps=1e-6)

    assert out.shape == (N, C, L)
    assert jnp.allclose(out, ref, atol=1e-5, rtol=1e-5), "mismatch vs reference"

    print("KERNEL_OK")
</pallas_src>

<mosaic_0001>
module attributes {stable_mosaic.version = 11 : i64} {
  func.func @_layernorm_kernel(%arg0: i32, %arg1: i32, %arg2: memref<1x4x16xf32, #tpu.memory_space<vmem>>, %arg3: memref<1x4x1xf32, #tpu.memory_space<vmem>>, %arg4: memref<1x4x1xf32, #tpu.memory_space<vmem>>, %arg5: memref<1x4x16xf32, #tpu.memory_space<vmem>>) attributes {dimension_semantics = [#tpu.dimension_semantics<parallel>, #tpu.dimension_semantics<parallel>], iteration_bounds = array<i64: 2, 1>, scalar_prefetch = 0 : i64, scratch_operands = 0 : i64, tpu.core_type = #tpu.core_type<tc>, window_params = [{transform_indices = @transform_0, window_bounds = array<i64: 1, 4, 16>}, {pipeline_mode = #tpu.pipeline_mode<synchronous>, transform_indices = @transform_1, window_bounds = array<i64: 1, 4, 1>}, {pipeline_mode = #tpu.pipeline_mode<synchronous>, transform_indices = @transform_2, window_bounds = array<i64: 1, 4, 1>}, {transform_indices = @transform_3, window_bounds = array<i64: 1, 4, 16>}]} {
    %c0 = arith.constant 0 : index
    %c0_0 = arith.constant 0 : index
    %c0_1 = arith.constant 0 : index
    %0 = vector.load %arg2[%c0, %c0_0, %c0_1] : memref<1x4x16xf32, #tpu.memory_space<vmem>>, vector<1x4x16xf32>
    %cst = arith.constant dense<0.000000e+00> : vector<1x16xf32>
    %1 = vector.multi_reduction <add>, %0, %cst [1] : vector<1x4x16xf32> to vector<1x16xf32>
    %2 = vector.shape_cast %1 : vector<1x16xf32> to vector<1x1x16xf32>
    %cst_2 = arith.constant 2.500000e-01 : f32
    %3 = vector.broadcast %cst_2 : f32 to vector<1x1x16xf32>
    %4 = arith.mulf %2, %3 : vector<1x1x16xf32>
    %5 = vector.broadcast %4 : vector<1x1x16xf32> to vector<1x4x16xf32>
    %6 = arith.subf %0, %5 : vector<1x4x16xf32>
    %7 = arith.mulf %6, %6 : vector<1x4x16xf32>
    %cst_3 = arith.constant dense<0.000000e+00> : vector<1x16xf32>
    %8 = vector.multi_reduction <add>, %7, %cst_3 [1] : vector<1x4x16xf32> to vector<1x16xf32>
    %9 = vector.shape_cast %8 : vector<1x16xf32> to vector<1x1x16xf32>
    %cst_4 = arith.constant 0.333333343 : f32
    %10 = vector.broadcast %cst_4 : f32 to vector<1x1x16xf32>
    %11 = arith.mulf %9, %10 : vector<1x1x16xf32>
    %cst_5 = arith.constant 0.000000e+00 : f32
    %12 = vector.broadcast %cst_5 : f32 to vector<1x1x16xf32>
    %13 = arith.maximumf %11, %12 : vector<1x1x16xf32>
    %14 = math.sqrt %13 : vector<1x1x16xf32>
    %cst_6 = arith.constant 9.99999997E-7 : f32
    %15 = vector.broadcast %cst_6 : f32 to vector<1x1x16xf32>
    %16 = arith.addf %14, %15 : vector<1x1x16xf32>
    %17 = tpu.reciprocal %16 : vector<1x1x16xf32> -> vector<1x1x16xf32>
    %c0_7 = arith.constant 0 : index
    %c0_8 = arith.constant 0 : index
    %c0_9 = arith.constant 0 : index
    %18 = vector.load %arg3[%c0_7, %c0_8, %c0_9] : memref<1x4x1xf32, #tpu.memory_space<vmem>>, vector<1x4x1xf32>
    %c0_10 = arith.constant 0 : index
    %c0_11 = arith.constant 0 : index
    %c0_12 = arith.constant 0 : index
    %19 = vector.load %arg4[%c0_10, %c0_11, %c0_12] : memref<1x4x1xf32, #tpu.memory_space<vmem>>, vector<1x4x1xf32>
    %20 = vector.broadcast %17 : vector<1x1x16xf32> to vector<1x4x16xf32>
    %21 = arith.mulf %6, %20 : vector<1x4x16xf32>
    %22 = vector.broadcast %18 : vector<1x4x1xf32> to vector<1x4x16xf32>
    %23 = arith.mulf %21, %22 : vector<1x4x16xf32>
    %24 = vector.broadcast %19 : vector<1x4x1xf32> to vector<1x4x16xf32>
    %25 = arith.addf %23, %24 : vector<1x4x16xf32>
    %c0_13 = arith.constant 0 : index
    %c0_14 = arith.constant 0 : index
    %c0_15 = arith.constant 0 : index
    %26 = vector.load %arg5[%c0_13, %c0_14, %c0_15] : memref<1x4x16xf32, #tpu.memory_space<vmem>>, vector<1x4x16xf32>
    tpu.vector_store %arg5[%c0_13, %c0_14, %c0_15], %25 {strides = array<i32>} : memref<1x4x16xf32, #tpu.memory_space<vmem>>, vector<1x4x16xf32>,
    return
  }
  func.func @transform_0(%arg0: i32, %arg1: i32) -> (i32, i32, i32) {
    %c0_i32 = arith.constant 0 : i32
    %c0_i32_0 = arith.constant 0 : i32
    return %arg0, %c0_i32, %arg1 : i32, i32, i32
  }
  func.func @transform_1(%arg0: i32, %arg1: i32) -> (i32, i32, i32) {
    %c0_i32 = arith.constant 0 : i32
    %c0_i32_0 = arith.constant 0 : i32
    %c0_i32_1 = arith.constant 0 : i32
    %c0_i32_2 = arith.constant 0 : i32
    return %c0_i32, %c0_i32_0, %c0_i32_1 : i32, i32, i32
  }
  func.func @transform_2(%arg0: i32, %arg1: i32) -> (i32, i32, i32) {
    %c0_i32 = arith.constant 0 : i32
    %c0_i32_0 = arith.constant 0 : i32
    %c0_i32_1 = arith.constant 0 : i32
    %c0_i32_2 = arith.constant 0 : i32
    return %c0_i32, %c0_i32_0, %c0_i32_1 : i32, i32, i32
  }
  func.func @transform_3(%arg0: i32, %arg1: i32) -> (i32, i32, i32) {
    %c0_i32 = arith.constant 0 : i32
    %c0_i32_0 = arith.constant 0 : i32
    return %arg0, %c0_i32, %arg1 : i32, i32, i32
  }
}

</mosaic_0001>

<bundles_post_ra>
// kernel: tpu_custom_call.1
= control target key start
LH: loop header
LB: loop body
LE: loop exit
PB: predicated region body
PF: predicated region fallthrough
CT: control target
= control target key end

     0   :  { %8 = vsyncpa [#allocation3], 0  ;;  %s603_s0 = inlined_call_operand.vmem [shape: f32[2,4,16], index: 0, kind: input, shape index: {}]   ;;  %s604_s1 = inlined_call_operand.vmem [shape: f32[1,4,1], index: 1, kind: input, shape index: {}]   ;;  %s605_s2 = inlined_call_operand.vmem [shape: f32[1,4,1], index: 2, kind: input, shape index: {}]   ;;  %s606_s3 = inlined_call_operand.hbm [shape: f32[2,4,16], index: 3, kind: output, shape index: {}]  }
   0x1   :  { %10 = vsyncpa [#allocation3 + $0x1], 0  ;;  %s495_s12 = smov 0   ;;  %s497_s13 = smov 0  }
   0x2   :  { %s499_s14 = smov 0   ;;  %s501_s15 = smov 0  }
   0x3   :  { %s503_s16 = smov 0   ;;  %s505_s17 = smov 0  }
   0x4 LB: > { %s323_s18 = sadd.s32 4294967295, %s471_s17   ;;  %s324_s19 = sadd.s32 4294967294, %s471_s17   ;;  %s471_s17 = sphi %s505_s17, %s16_s17   ;;  %s467_s16 = sphi %s503_s16, %s613_s16   ;;  %s463_s15 = sphi %s501_s15, %s612_s15   ;;  %s459_s14 = sphi %s499_s14, %s611_s14   ;;  %s455_s13 = sphi %s497_s13, %s610_s13   ;;  %s451_s12 = sphi %s495_s12, %s609_s12  }
   0x5   : > { %s28_s20 = sadd.s32 1, %s467_s16  ;;  %s107_s21 = sadd.s32 1, %s459_s14 }
   0x6   : > { %p30_p0 = scmp.ge.s32.totalorder %s28_s20, 2  ;;  %p117_p1 = scmp.ne.s32.totalorder %s459_s14, %s455_s13 }
   0x7   : > { %p118_p2 = scmp.eq.s32.totalorder %s323_s18, 1  ;;  %p123_p3 = scmp.ne.s32.totalorder %s455_s13, %s451_s12 }
   0x8   : > { %s615_s20 = smov (%p30_p0, %s28_s20), 0  ;;  %p124_p5 = scmp.eq.s32.totalorder %s324_s19, 1 }
   0x9   : > { %p535_p4 = por %p118_p2, %p117_p1  ;;  %s102_s23 = ssub.s32 %s467_s16, %s615_s20 }
   0xa   : > { %p327_p6 = scmp.ge.s32.totalorder %s471_s17, 1  ;;  %p105_p7 = scmp.eq.s32.totalorder %s102_s23, 0 }
   0xb   : > { %p542_p8 = por %p124_p5, %p123_p3  ;;  %p158_p9 = scmp.lt.s32.totalorder %s471_s17, 3 }
   0xc   : > { %s548_s25 = scalar_select %p105_p7, %s459_s14, %s107_s21  }
   0xd   : > { %p159_p10 = pnand %p327_p6, %p158_p9 }
   0xe   : > { %p184_p11 = scmp.lt.s32.totalorder (!%p159_p10), %s463_s15, 1  ;;  %s181_s8 = sand.u32 (!%p159_p10), 1, %s455_s13  }
   0xf   : > { %162 = sbr.rel (%p159_p10) target bundleno = 165 (0xa5), region = 32  ;;  %s328_s9 = sshll.u32 (!%p159_p10), %s181_s8, 2 }
  0x10   : > { %s331_s10 = sshll.u32 (!%p159_p10), %s463_s15, 6  ;;  %s183_s11 = scalar_lea.vmem (!%p159_p10), [#allocation2], %s328_s9 }
  0x11   : > { %s252_s18 = sshll.u32 (!%p159_p10), %s183_s11, 4  ;;  %s250_s23 = scalar_lea.hbm (!%p159_p10), %s606_s3, %s331_s10  ;;  %s253_s18 = int_to_ptr.vmem [resolvable:$true] %s252_s18 }
  0x12   : > { %s238_s26 = scalar_lea.sflag (!%p159_p10), [#allocation3], %s181_s8  ;;  %s395_s27 = scalar_lea.vmem (!%p159_p10), %s253_s18, 64 }
  0x13   : > { %p396_p12 = scmp.ne.s32.totalorder (!%p159_p10), %s253_s18, %s395_s27 }
  0x14   : > { %v221_v0 = vld [vmem:[%s604_s1] sm:$0xf]  ;;  %v473_v1 = vmov 0   ;;  %s185_s28 = scalar_select %p184_p11, %s463_s15, 1  ;;  %vm192_vm0 = vcmask 125952  }
  0x15   : > { %390 = vset.pattern.permute.xlu0 %v473_v1  ;;  %v222_v2 = vld [vmem:[%s605_s2] sm:$0xf]  ;;  %p397_p13 = pnand %p396_p12, %p535_p4 }
  0x16   : > { %226 = vperm.xlu0 %390, %v221_v0   ;;  %s329_s4 = sshll.u32 %s185_s28, 2  ;;  %s474_s28 = smov [#allocation2]  }
  0x17   : > { %s190_s7 = scalar_lea.vmem %s603_s0, %s329_s4  ;;  %p398_p0 = pneg %p397_p13 }
  0x18   : > { %v191_v3 = vld [vmem:[%s190_s7] sm:$0xf]  ;;  %s399_s15 = sshll.u32 %s474_s28, 4  ;;  %s400_s15 = int_to_ptr.vmem [resolvable:$false] %s399_s15 }
  0x19   : > { %v193_v4 = vsel %vm192_vm0, %v191_v3, 0.0  ;;  %s401_s29 = scalar_lea.vmem %s400_s15, 128  ;;  %p402_p1 = scmp.lt.s32.totalorder %s253_s18, %s400_s15 }
  0x1a   : > { %232 = vperm.xlu0 %390, %v222_v2   ;;  %v194_v5 = vrot.slane %v193_v4, 4  ;;  %p403_p2 = scmp.lt.s32.totalorder %s401_s29, %s395_s27 }
  0x1c   : > { %v195_v6 = vadd.f32 %v194_v5, %v193_v4  ;;  %p404_p3 = por %p403_p2, %p402_p1 }
  0x1e   : > { %v196_v7 = vrot.slane %v195_v6, 2  ;;  %p405_p5 = pnand %p404_p3, %p398_p0 }
  0x20   : > { %v197_v8 = vadd.f32 %v196_v7, %v195_v6 }
  0x22   : > { %v198_v9 = vrot.slane %v197_v8, 1 }
  0x24   : > { %v199_v10 = vadd.f32 %v198_v9, %v197_v8 }
  0x26   : > { %v200_v11 = vmul.f32 0.25, %v199_v10 }
  0x28   : > { %v201_v12 = vsub.f32 %v191_v3, %v200_v11 }
  0x2a   : > { %v202_v13 = vmul.f32 %v201_v12, %v201_v12 }
  0x2c   : > { %v203_v14 = vsel %vm192_vm0, %v202_v13, 0.0 }
  0x2d   : > { %v204_v15 = vrot.slane %v203_v14, 4 }
  0x2f   : > { %v205_v16 = vadd.f32 %v204_v15, %v203_v14 }
  0x31   : > { %v206_v17 = vrot.slane %v205_v16, 2 }
  0x33   : > { %v207_v18 = vadd.f32 %v206_v17, %v205_v16 }
  0x35   : > { %v208_v19 = vrot.slane %v207_v18, 1 }
  0x37   : > { %v209_v20 = vadd.f32 %v208_v19, %v207_v18 }
  0x39   : > { %v210_v21 = vmul.f32 0.33333334, %v209_v20 }
  0x3b   : > { %v211_v22 = vmax.f32 %v210_v21, 0.0 }
  0x3d   : > { %391 = vrsqrt.f32 %v211_v22  ;;  %vm214_vm1 = vcmp.eq.f32.partialorder %v211_v22, inf  ;;  %v217_v25 = vand.u32 2147483648, %v211_v22  ;;  %vm216_vm2 = vcmp.eq.f32.partialorder %v211_v22, 0.0 }
  0x4a   : > { %v392_v23 = vpop.eup %391 }
  0x4b   : > { %v213_v24 = vmul.f32 %v392_v23, %v211_v22 }
  0x4d   : > { %v215_v26 = vsel %vm214_vm1, %v211_v22, %v213_v24 }
  0x4e   : > { %v218_v27 = vsel %vm216_vm2, %v217_v25, %v215_v26 }
  0x4f   : > { %v219_v28 = vadd.f32 1e-06, %v218_v27 }
  0x51   : > { %393 = vrcp.f32 %v219_v28 }
  0x5e   : > { %v394_v29 = vpop.eup %393 }
  0x5f   : > { %v223_v30 = vmul.f32 %v394_v29, %v201_v12 }
  0x91   : > { %v227_v31 = vpop.permute.xlu0 %226 }
  0x92   : > { %v229_v32 = vmul.f32 %v227_v31, %v223_v30 }
  0x95   : > { %v233_v33 = vpop.permute.xlu0 %232 }
  0x96   : > { %v235_v34 = vadd.f32 %v233_v33, %v229_v32 }
  0x98   : > { %236 = vst.msk [vmem:[%s183_s11] sm:$0xf] %vm192_vm0, %v235_v34 }
  0x99   : > { %408 = shalt.err (!%p405_p5)
}
  0x9a   : > { %s409_s30 = scalar_lea.hbm %s250_s23, 64  ;;  %s413_s6 = scalar_lea.hbm %s606_s3, 128 }
  0x9b   : > { %p410_p6 = scmp.ne.s32.totalorder %s250_s23, %s409_s30  ;;  %p414_p10 = scmp.lt.s32.totalorder %s250_s23, %s606_s3 }
  0x9c   : > { %p415_p11 = scmp.lt.s32.totalorder %s413_s6, %s409_s30 }
  0x9d   : > { %p411_p7 = pnand %p410_p6, %p535_p4 }
  0x9e   : > { %p416_p12 = por %p415_p11, %p414_p10 }
  0x9f   : > { %p412_p9 = pneg %p411_p7 }
  0xa1   : > { %p417_p13 = pnand %p416_p12, %p412_p9 }
  0xa3   : > { %420 = shalt.err (!%p417_p13)
}
  0xa4   : > { %334 = dma.vmem_to_hbm [thread:$0]  (%p535_p4), %s253_s18, 64, %s250_s23, %s238_s26  }
  0xa5 PF: > { %p340_p0 = scmp.ge.s32.totalorder %s471_s17, 2  ;;  %s264_s9 = sand.u32 1, %s451_s12  }
  0xa6   : > { %s265_s10 = scalar_lea.sflag [#allocation3], %s264_s9 }
  0xa7   : > { %p337_p1 = pnand %p340_p0, %p542_p8 }
  0xa9   : > { %p338_p2 = pneg %p337_p1 }
  0xab   : > { %446 = dma.done.wait (%p338_p2), %s265_s10, 64  }
  0xac   : > { %448 = vsyncadd (%p338_p2), %s265_s10, 4294967232  ;;  %s16_s17 = sadd.s32 1, %s471_s17   ;;  %s609_s12 = smov %s455_s13 }
  0xad   : > { %p13_p3 = scmp.ge.s32.totalorder %s16_s17, 4   ;;  %s610_s13 = smov %s459_s14 }
  0xae   : > { %s611_s14 = smov %s548_s25  ;;  %s612_s15 = smov %s467_s16 }
  0xaf   : > { %s613_s16 = smov %s615_s20  ;;  %15 = sbr.rel (!%p13_p3) target bundleno = 4 (0x4), region = 67 }
  0xb4   :  { %270 = vsyncpa [#allocation3], 1 }
  0xb5   :  { %272 = vsyncpa [#allocation3 + $0x1], 1 }

</bundles_post_ra>
